<compile_context>
chip_gen: v7x
topology: tpu7x:2x2x1
jax: 0.10.0
libtpu: 0.0.40
codegen_flags: <defaults>
</compile_context>

<pallas_src>
import functools
import math

import jax
import jax.numpy as jnp
from jax.experimental import pallas as pl
from jax.experimental.pallas import tpu as pltpu


_MIB = 1024 * 1024


def _round_up(v, m):
    return ((v + m - 1) // m) * m


def _vmem_budget_bytes():
    """~75% of per-core VMEM; fall back to 64 MiB (v7x, the smallest generation)."""
    cap = 64 * _MIB
    try:
        info = pltpu.get_tpu_info()
        cap = int(getattr(info, "vmem_capacity_bytes", cap)) or cap
    except Exception:
        pass
    return int(cap * 3 // 4)


def _vmem_limit(estimate, budget):
    return int(min(max(2 * estimate, 32 * _MIB), budget))


def _matmul_vmem_bytes(tb, tc, Dp, cbytes, wbytes, normalize_w, emit_cosine):
    """Rough VMEM footprint of the matmul kernel: double-buffered tiles plus
    in-kernel temporaries."""
    n_out = 2 if emit_cosine else 1
    est = 2 * tb * Dp * cbytes            # x_hat tiles (double-buffered)
    est += 2 * tc * Dp * wbytes           # W tiles (double-buffered)
    est += 2 * n_out * tb * tc * 4        # f32 output tiles (double-buffered)
    est += tb * tc * 4                    # f32 dot accumulator
    if normalize_w:
        est += tc * Dp * (8 + cbytes)     # w f32 + w_hat f32 + compute-dtype cast
    return est


# --------------------------------------------------------------------------
# Kernels
# --------------------------------------------------------------------------

def _normalize_x_kernel(x_ref, feat_ref, *xhat_refs):
    """Row-L2-normalize a [tb, D] tile of backbone features.

    feat_ref : f32 normalized features (the module's `feature` output)
    xhat_refs: optional second output holding x_hat in the matmul compute dtype
               (only present when the compute dtype differs from f32).
    """
    x = x_ref[...].astype(jnp.float32)
    # max(sqrt(s), 1e-12) == sqrt(max(s, 1e-24)); rsqrt runs on the EUP.
    inv = jax.lax.rsqrt(jnp.maximum(jnp.sum(x * x, axis=1, keepdims=True), 1e-24))
    x_hat = x * inv
    feat_ref[...] = x_hat
    if xhat_refs:
        xhat_refs[0][...] = x_hat.astype(xhat_refs[0].dtype)


def _normalize_w_kernel(w_ref, what_ref):
    """Row-L2-normalize a [tc, D] tile of classifier weights (compute dtype out)."""
    w = w_ref[...].astype(jnp.float32)
    inv = jax.lax.rsqrt(jnp.maximum(jnp.sum(w * w, axis=1, keepdims=True), 1e-24))
    what_ref[...] = (w * inv).astype(what_ref.dtype)


def _cosine_matmul_kernel(gamma_ref, xhat_ref, w_ref, out_ref, *cos_refs,
                          normalize_w):
    """One (batch-tile i, class-tile j) grid step.

    gamma_ref: (1,1) f32 scalar in SMEM (runtime value, no recompile on change)
    xhat_ref : [tb, D]  pre-normalized feature tile (compute dtype)
    w_ref    : [tc, D]  classifier weight rows (raw if normalize_w, else w_hat)
    out_ref  : [tb, tc] gamma * cosine
    cos_refs : optional [tb, tc] cosine output
    """
    lhs = xhat_ref[...]                                           # [tb, D]
    if normalize_w:
        w = w_ref[...].astype(jnp.float32)
        inv = jax.lax.rsqrt(
            jnp.maximum(jnp.sum(w * w, axis=1, keepdims=True), 1e-24))
        rhs = (w * inv).astype(lhs.dtype)                         # [tc, D]
    else:
        rhs = w_ref[...]                                          # pre-normalized

    # Contract both last dims: x_hat @ w_hat.T with no explicit transpose
    # (feeds the MXU directly), f32 accumulation.
    cosine = jax.lax.dot_general(
        lhs, rhs,
        dimension_numbers=(((1,), (1,)), ((), ())),
        preferred_element_type=jnp.float32)                       # [tb, tc]

    out_ref[...] = (cosine * gamma_ref[0, 0]).astype(out_ref.dtype)
    if cos_refs:
        cos_refs[0][...] = cosine.astype(cos_refs[0].dtype)


# --------------------------------------------------------------------------
# Wrapper
# --------------------------------------------------------------------------

def norm_resnet50_head(x, weight, gamma=1.0, *, use_bf16_matmul=True,
                       prenormalize_weight=None, emit_cosine=True):
    """x: [B, D] backbone features, weight: [C, D] classifier weight.

    Returns (feature [B, D] f32, output [B, C] f32, cosine [B, C] f32 or None).

    use_bf16_matmul    : run the MXU in bf16 with f32 accumulation (default;
                         unit-norm rows keep cosine error ~1e-3).  Pass False
                         for bit-accurate f32 logits.
    prenormalize_weight: normalize W once (Pallas pre-pass) and stream it to the
                         matmul in the compute dtype.  Default (None) enables it
                         when W would otherwise be re-streamed (>= 2 batch
                         tiles) and the compute dtype is bf16, halving the
                         dominant W HBM traffic.
    emit_cosine        : also materialize the raw cosine (the module's auxiliary
                         output).  False halves the output writeback when only
                         gamma*cosine is needed.
    """
    B, D = x.shape
    C, D2 = weight.shape
    assert D == D2, (D, D2)

    compute_dtype = jnp.bfloat16 if use_bf16_matmul else jnp.float32
    cbytes = 2 if use_bf16_matmul else 4
    xbytes = x.dtype.itemsize
    wbytes_in = weight.dtype.itemsize

    budget = _vmem_budget_bytes()

    # ---- padding / tile selection (lane = 128, sublane = 8 aligned) --------
    Dp = _round_up(D, 128)

    Cp = _round_up(C, 128)
    if Cp <= 512:
        tc = Cp
    else:
        Cp = _round_up(Cp, 512)
        tc = 512

    Bp8 = _round_up(B, 8)
    if Bp8 <= 128:
        tb = Bp = Bp8
    else:
        # Largest batch tile that fits the VMEM budget (worst-case f32 W stream
        # with in-kernel normalization).  Bigger tb -> W streamed fewer times.
        tb = 128
        b_cap = _round_up(B, 128)
        for cand in (512, 256, 128):
            if cand > b_cap:
                continue
            est = _matmul_vmem_bytes(cand, tc, Dp, cbytes, wbytes=4,
                                     normalize_w=True, emit_cosine=emit_cosine)
            if 2 * est <= budget:
                tb = cand
                break
        Bp = _round_up(B, tb)

    nb, nc = Bp // tb, Cp // tc

    if prenormalize_weight is None:
        prenormalize_weight = use_bf16_matmul and nb >= 2

    # Zero padding is benign: zero feature columns change neither norms nor dot
    # products; zero rows give zero outputs (rsqrt(1e-24) * 0 == 0), sliced off.
    xp = x if (Bp, Dp) == (B, D) else jnp.pad(x, ((0, Bp - B), (0, Dp - D)))
    wp = weight if (Cp, Dp) == (C, D) else jnp.pad(weight,
                                                   ((0, Cp - C), (0, Dp - D)))

    # ---- stage 1: normalize x (feature output + x_hat in compute dtype) ----
    nx_est = 2 * tb * Dp * (xbytes + 4 + cbytes) + 2 * tb * Dp * 4
    if use_bf16_matmul:
        nx_out_shape = (jax.ShapeDtypeStruct((Bp, Dp), jnp.float32),
                        jax.ShapeDtypeStruct((Bp, Dp), compute_dtype))
        nx_out_specs = (pl.BlockSpec((tb, Dp), lambda i: (i, 0)),
                        pl.BlockSpec((tb, Dp), lambda i: (i, 0)))
    else:
        nx_out_shape = (jax.ShapeDtypeStruct((Bp, Dp), jnp.float32),)
        nx_out_specs = (pl.BlockSpec((tb, Dp), lambda i: (i, 0)),)

    nx_results = pl.pallas_call(
        _normalize_x_kernel,
        out_shape=nx_out_shape,
        grid=(nb,),
        in_specs=[pl.BlockSpec((tb, Dp), lambda i: (i, 0))],
        out_specs=nx_out_specs,
        compiler_params=pltpu.CompilerParams(
            dimension_semantics=("parallel",),
            vmem_limit_bytes=_vmem_limit(nx_est, budget)),
    )(xp)
    feature = nx_results[0]
    x_hat = nx_results[1] if use_bf16_matmul else feature

    # ---- stage 2 (optional): pre-normalize W, stream it in compute dtype ---
    if prenormalize_weight:
        nw_est = 2 * tc * Dp * (wbytes_in + cbytes) + 2 * tc * Dp * 4
        w_stream = pl.pallas_call(
            _normalize_w_kernel,
            out_shape=jax.ShapeDtypeStruct((Cp, Dp), compute_dtype),
            grid=(nc,),
            in_specs=[pl.BlockSpec((tc, Dp), lambda j: (j, 0))],
            out_specs=pl.BlockSpec((tc, Dp), lambda j: (j, 0)),
            compiler_params=pltpu.CompilerParams(
                dimension_semantics=("parallel",),
                vmem_limit_bytes=_vmem_limit(nw_est, budget)),
        )(wp)
        normalize_w = False
    else:
        w_stream = wp
        normalize_w = True

    # ---- stage 3: cosine matmul (stateless -> both grid axes parallel) -----
    gamma_arr = jnp.full((1, 1), gamma, dtype=jnp.float32)

    out_shapes = [jax.ShapeDtypeStruct((Bp, Cp), jnp.float32)]
    out_specs = [pl.BlockSpec((tb, tc), lambda i, j: (i, j))]
    if emit_cosine:
        out_shapes.append(jax.ShapeDtypeStruct((Bp, Cp), jnp.float32))
        out_specs.append(pl.BlockSpec((tb, tc), lambda i, j: (i, j)))

    mm_est = _matmul_vmem_bytes(tb, tc, Dp, cbytes, w_stream.dtype.itemsize,
                                normalize_w, emit_cosine)

    kernel = functools.partial(_cosine_matmul_kernel, normalize_w=normalize_w)
    results = pl.pallas_call(
        kernel,
        out_shape=tuple(out_shapes),
        grid=(nb, nc),
        in_specs=[
            pl.BlockSpec(memory_space=pltpu.MemorySpace.SMEM),   # gamma scalar
            pl.BlockSpec((tb, Dp), lambda i, j: (i, 0)),         # x_hat tile
            pl.BlockSpec((tc, Dp), lambda i, j: (j, 0)),         # W / w_hat tile
        ],
        out_specs=tuple(out_specs),
        compiler_params=pltpu.CompilerParams(
            # Kernel carries no state across the grid, so both axes can shard
            # across TensorCores (v7x megacore) even when nb == 1.
            dimension_semantics=("parallel", "parallel"),
            vmem_limit_bytes=_vmem_limit(mm_est, budget)),
    )(gamma_arr, x_hat, w_stream)

    output = results[0][:B, :C]
    cosine = results[1][:B, :C] if emit_cosine else None
    return feature[:B, :D], output, cosine


# --------------------------------------------------------------------------
# Reference + self-test
# --------------------------------------------------------------------------

def _reference(x, weight, gamma):
    x = x.astype(jnp.float32)
    w = weight.astype(jnp.float32)
    xh = x / jnp.maximum(jnp.linalg.norm(x, axis=1, keepdims=True), 1e-12)
    wh = w / jnp.maximum(jnp.linalg.norm(w, axis=1, keepdims=True), 1e-12)
    cosine = xh @ wh.T
    return xh, cosine * gamma, cosine


if __name__ == "__main__":
    # ---- small, module-consistent shapes: batch=4, num_features=128, classes=16
    B, D, C = 4, 128, 16
    gamma = 2.5

    key = jax.random.PRNGKey(0)
    kx, kw, kx2, kw2 = jax.random.split(key, 4)

    x = jax.random.normal(kx, (B, D), dtype=jnp.float32)
    # Norm_Linear.reset_parameters: uniform(-stdv, stdv), stdv = 1/sqrt(in_features).
    stdv = 1.0 / math.sqrt(D)
    weight = jax.random.uniform(kw, (C, D), minval=-stdv, maxval=stdv,
                                dtype=jnp.float32)

    f_ref, o_ref, c_ref = _reference(x, weight, gamma)

    # Default bf16-MXU path.
    feature, output, cosine = jax.block_until_ready(
        norm_resnet50_head(x, weight, gamma))
    assert jnp.allclose(feature, f_ref, atol=1e-5, rtol=1e-5)
    assert jnp.allclose(output, o_ref, atol=1e-2, rtol=1e-2)
    assert jnp.allclose(cosine, c_ref, atol=1e-2, rtol=1e-2)

    # Exact f32 path.
    feature, output, cosine = jax.block_until_ready(
        norm_resnet50_head(x, weight, gamma, use_bf16_matmul=False))
    assert jnp.allclose(feature, f_ref, atol=1e-5, rtol=1e-5)
    assert jnp.allclose(output, o_ref, atol=1e-5, rtol=1e-5)
    assert jnp.allclose(cosine, c_ref, atol=1e-5, rtol=1e-5)

    # Single-output variant (no cosine writeback).
    feat_nc, out_nc, cos_nc = jax.block_until_ready(
        norm_resnet50_head(x, weight, gamma, emit_cosine=False))
    assert cos_nc is None
    assert jnp.allclose(out_nc, o_ref, atol=1e-2, rtol=1e-2)

    # ---- padding + multi-tile grid; exercises the pre-normalized bf16 W stream
    B2, D2, C2 = 260, 192, 700
    x2 = jax.random.normal(kx2, (B2, D2), dtype=jnp.float32)
    stdv2 = 1.0 / math.sqrt(D2)
    w2 = jax.random.uniform(kw2, (C2, D2), minval=-stdv2, maxval=stdv2,
                            dtype=jnp.float32)
    feature2, output2, cosine2 = jax.block_until_ready(
        norm_resnet50_head(x2, w2, gamma))
    f2_ref, o2_ref, c2_ref = _reference(x2, w2, gamma)
    assert jnp.allclose(feature2, f2_ref, atol=1e-5, rtol=1e-5)
    assert jnp.allclose(output2, o2_ref, atol=1e-2, rtol=1e-2)
    assert jnp.allclose(cosine2, c2_ref, atol=1e-2, rtol=1e-2)

    print("KERNEL_OK")
</pallas_src>

<mosaic_0001>
module attributes {stable_mosaic.version = 11 : i64} {
  func.func @_normalize_x_kernel(%arg0: i32, %arg1: memref<8x128xf32, #tpu.memory_space<vmem>>, %arg2: memref<8x128xf32, #tpu.memory_space<vmem>>, %arg3: memref<8x128xbf16, #tpu.memory_space<vmem>>) attributes {dimension_semantics = [#tpu.dimension_semantics<parallel>], iteration_bounds = array<i64: 1>, scalar_prefetch = 0 : i64, scratch_operands = 0 : i64, tpu.core_type = #tpu.core_type<tc>, window_params = [{transform_indices = @transform_0, window_bounds = array<i64: 8, 128>}, {transform_indices = @transform_1, window_bounds = array<i64: 8, 128>}, {transform_indices = @transform_2, window_bounds = array<i64: 8, 128>}]} {
    %c0 = arith.constant 0 : index
    %c0_0 = arith.constant 0 : index
    %0 = vector.load %arg1[%c0, %c0_0] : memref<8x128xf32, #tpu.memory_space<vmem>>, vector<8x128xf32>
    %1 = arith.mulf %0, %0 : vector<8x128xf32>
    %cst = arith.constant dense<0.000000e+00> : vector<8xf32>
    %2 = vector.multi_reduction <add>, %1, %cst [1] : vector<8x128xf32> to vector<8xf32>
    %3 = vector.shape_cast %2 : vector<8xf32> to vector<8x1xf32>
    %cst_1 = arith.constant 1.000000e-24 : f32
    %4 = vector.broadcast %cst_1 : f32 to vector<8x1xf32>
    %5 = arith.maximumf %3, %4 : vector<8x1xf32>
    %6 = math.rsqrt %5 : vector<8x1xf32>
    %7 = vector.broadcast %6 : vector<8x1xf32> to vector<8x128xf32>
    %8 = arith.mulf %0, %7 : vector<8x128xf32>
    %c0_2 = arith.constant 0 : index
    %c0_3 = arith.constant 0 : index
    %9 = vector.load %arg2[%c0_2, %c0_3] : memref<8x128xf32, #tpu.memory_space<vmem>>, vector<8x128xf32>
    tpu.vector_store %arg2[%c0_2, %c0_3], %8 {strides = array<i32>} : memref<8x128xf32, #tpu.memory_space<vmem>>, vector<8x128xf32>,
    %10 = arith.truncf %8 : vector<8x128xf32> to vector<8x128xbf16>
    %c0_4 = arith.constant 0 : index
    %c0_5 = arith.constant 0 : index
    %11 = vector.load %arg3[%c0_4, %c0_5] : memref<8x128xbf16, #tpu.memory_space<vmem>>, vector<8x128xbf16>
    tpu.vector_store %arg3[%c0_4, %c0_5], %10 {strides = array<i32>} : memref<8x128xbf16, #tpu.memory_space<vmem>>, vector<8x128xbf16>,
    return
  }
  func.func @transform_0(%arg0: i32) -> (i32, i32) {
    %c0_i32 = arith.constant 0 : i32
    %c0_i32_0 = arith.constant 0 : i32
    return %arg0, %c0_i32 : i32, i32
  }
  func.func @transform_1(%arg0: i32) -> (i32, i32) {
    %c0_i32 = arith.constant 0 : i32
    %c0_i32_0 = arith.constant 0 : i32
    return %arg0, %c0_i32 : i32, i32
  }
  func.func @transform_2(%arg0: i32) -> (i32, i32) {
    %c0_i32 = arith.constant 0 : i32
    %c0_i32_0 = arith.constant 0 : i32
    return %arg0, %c0_i32 : i32, i32
  }
}

</mosaic_0001>

<bundles_post_ra>
// kernel: tpu_custom_call.1
= control target key start
LH: loop header
LB: loop body
LE: loop exit
PB: predicated region body
PF: predicated region fallthrough
CT: control target
= control target key end

     0   :  { %8 = vsyncpa [#allocation3], 0  ;;  %s194_s0 = inlined_call_operand.hbm [shape: f32[8,128], index: 0, kind: input, shape index: {}]   ;;  %s195_s1 = inlined_call_operand.hbm [shape: f32[8,128], index: 1, kind: output, shape index: {0}]   ;;  %s196_s2 = inlined_call_operand.hbm [shape: bf16[8,128], index: 2, kind: output, shape index: {1}]  }
   0x1   :  { %9 = vsyncpa [#allocation4], 0 }
   0x2   :  { %10 = vsyncpa [#allocation7], 0  ;;  %s140_s9 = smov [#allocation2]   ;;  %s68_s13 = scalar_lea.hbm %s194_s0, 128 }
   0x3   :  { %s17_s10 = sshll.u32 %s140_s9, 4  ;;  %p69_p0 = scmp.ne.s32.totalorder %s194_s0, %s68_s13  ;;  %s18_s10 = int_to_ptr.vmem [resolvable:$true] %s17_s10 }
   0x4   :  { %p72_p1 = scmp.lt.u32.totalorder %s68_s13, %s194_s0 }
   0x6   :  { %p74_p2 = pnand %p72_p1, %p69_p0 }
   0x8   :  { %77 = shalt.err (!%p74_p2)
}
   0x9   :  { %s78_s18 = scalar_lea.vmem %s18_s10, 128  ;;  %p83_p4 = scmp.lt.s32.totalorder %s18_s10, %s18_s10 }
   0xa   :  { %p79_p3 = scmp.ne.s32.totalorder %s18_s10, %s78_s18  ;;  %p84_p5 = scmp.lt.s32.totalorder %s78_s18, %s78_s18 }
   0xc   :  { %p85_p6 = por %p84_p5, %p83_p4 }
   0xe   :  { %p86_p7 = pnand %p85_p6, %p79_p3 }
  0x10   :  { %89 = shalt.err (!%p86_p7)
}
  0x11   :  { %20 = dma.hbm_to_vmem [thread:$0]  %s194_s0, 128, %s18_s10, [#allocation3]  }
  0x12   :  { %134 = dma.done.wait [#allocation3], 128  }
  0x13   :  { %135 = vsyncadd [#allocation3], 4294967168  ;;  %v24_v0 = vld [vmem:[#allocation2] sm:$0xff]  ;;  %s141_s21 = smov [#allocation5]   ;;  %s142_s23 = smov [#allocation6]  }
  0x14   :  { %v25_v1 = vmul.f32 %v24_v0, %v24_v0  ;;  %s40_s22 = sshll.u32 %s141_s21, 4  ;;  %s50_s24 = sshll.u32 %s142_s23, 4  ;;  %s41_s22 = int_to_ptr.vmem [resolvable:$true] %s40_s22  ;;  %s51_s24 = int_to_ptr.vmem [resolvable:$true] %s50_s24 }
  0x15   :  { %s90_s25 = scalar_lea.vmem %s41_s22, 128  ;;  %p95_p9 = scmp.lt.s32.totalorder %s41_s22, %s41_s22 }
  0x16   :  { %26 = vadd.xlane.f32.xlu0 %v25_v1  ;;  %p91_p8 = scmp.ne.s32.totalorder %s41_s22, %s90_s25  ;;  %p96_p10 = scmp.lt.s32.totalorder %s90_s25, %s90_s25 }
  0x18   :  { %p97_p11 = por %p96_p10, %p95_p9 }
  0x1a   :  { %p98_p12 = pnand %p97_p11, %p91_p8 }
  0xa3   :  { %v27_v2 = vpop.xlane.xlu0 %26 }
  0xa4   :  { %v28_v3 = vmax.f32 %v27_v2, 1e-24 }
  0xa6   :  { %66 = vrsqrt.f32 %v28_v3 }
  0xb0   :  { %v67_v4 = vpop.eup %66 }
  0xb1   :  { %v30_v5 = vmul.f32 %v67_v4, %v24_v0 }
  0xb3   :  { %31 = vst [vmem:[#allocation5] sm:$0xff] %v30_v5  ;;  %v32_v6 = vpack.c.bf16 %v30_v5, %v30_v5 }
  0xb4   :  { %101 = shalt.err (!%p98_p12)
}
  0xb5   :  { %s102_s27 = scalar_lea.hbm %s195_s1, 128 }
  0xb6   :  { %p103_p13 = scmp.ne.s32.totalorder %s195_s1, %s102_s27  ;;  %p106_p0 = scmp.lt.u32.totalorder %s102_s27, %s195_s1 }
  0xb8   :  { %p108_p1 = pnand %p106_p0, %p103_p13 }
  0xba   :  { %111 = shalt.err (!%p108_p1)
}
  0xbb   :  { %43 = dma.vmem_to_hbm [thread:$0]  %s41_s22, 128, %s195_s1, [#allocation4]   ;;  %33 = vst [vmem:[#allocation6] sm:$0xf] %v32_v6 }
  0xbc   :  { %s112_s6 = scalar_lea.vmem %s51_s24, 64  ;;  %p117_p3 = scmp.lt.s32.totalorder %s51_s24, %s51_s24 }
  0xbd   :  { %p113_p2 = scmp.ne.s32.totalorder %s51_s24, %s112_s6  ;;  %p118_p4 = scmp.lt.s32.totalorder %s112_s6, %s112_s6 }
  0xbf   :  { %p119_p5 = por %p118_p4, %p117_p3 }
  0xc1   :  { %p120_p6 = pnand %p119_p5, %p113_p2 }
  0xc3   :  { %123 = shalt.err (!%p120_p6)
}
  0xc4   :  { %s124_s9 = scalar_lea.hbm %s196_s2, 64 }
  0xc5   :  { %p125_p7 = scmp.ne.s32.totalorder %s196_s2, %s124_s9  ;;  %p128_p8 = scmp.lt.u32.totalorder %s124_s9, %s196_s2 }
  0xc7   :  { %p130_p9 = pnand %p128_p8, %p125_p7 }
  0xc9   :  { %133 = shalt.err (!%p130_p9)
}
  0xca   :  { %53 = dma.vmem_to_hbm [thread:$0]  %s51_s24, 64, %s196_s2, [#allocation7]  }
  0xcb   :  { %136 = dma.done.wait [#allocation4], 128  }
  0xcc   :  { %137 = vsyncadd [#allocation4], 4294967168 }
  0xcd   :  { %138 = dma.done.wait [#allocation7], 64  }
  0xce   :  { %139 = vsyncadd [#allocation7], 4294967232 }
  0xcf   :  { %60 = vsyncpa [#allocation3], 1 }
  0xd0   :  { %61 = vsyncpa [#allocation4], 1 }
  0xd1   :  { %62 = vsyncpa [#allocation7], 1 }

</bundles_post_ra>
